<compile_context>
chip_gen: v5e
topology: v5e:2x2
jax: 0.10.0
libtpu: 0.0.40
codegen_flags: <defaults>
</compile_context>

<pallas_src>
import jax
import jax.numpy as jnp
from jax import lax
from jax.experimental import pallas as pl
from jax.experimental.pallas import tpu as pltpu

_INV_SQRT2 = 0.7071067811865476  # 1/sqrt(2)
_LANES = 128
_SUBLANES = 8


def _entropy_kernel(x_ref, mean_ref, scale_ref, out_ref):
    x = x_ref[...]
    mean = mean_ref[...]
    scale = scale_ref[...]

    # scale[scale == 0] = 1e-9
    scale = jnp.where(scale == 0.0, jnp.float32(1e-9), scale)

    # inv = 1 / (scale * sqrt(2)).  Exact divide keeps parity with the erf
    # reference; on v7x `pl.reciprocal(scale, approx=True)` would move this
    # onto the otherwise-idle EUP slot at the cost of low-order bits.
    inv = jnp.float32(_INV_SQRT2) / scale
    z = (x - mean) * inv            # z-score of the bin midpoint
    h = jnp.float32(0.5) * inv      # half-bin width in z units

    # 0.5*(1+erf(zu)) - 0.5*(1+erf(zl)) == 0.5*(erf(zu) - erf(zl))
    like = jnp.float32(0.5) * jnp.abs(lax.erf(z + h) - lax.erf(z - h))

    # Low_bound.apply forward: clamp(min=1e-6)
    out_ref[...] = jnp.maximum(like, jnp.float32(1e-6))


def _choose_row_block(num_rows, outer_parallel):
    """Row-block (sublane) size: big for HBM bandwidth, small enough to keep
    a usable grid for pipelining / v7x megacore sharding."""
    rb = min(2048, num_rows)
    rb -= rb % _SUBLANES
    rb = max(rb, _SUBLANES)
    # Aim for >= ~8 grid steps (2 cores x 2 buffers x 2), but never shrink
    # below 512 rows (smaller tiles start losing HBM roofline).
    while rb > 512 and outer_parallel * ((num_rows + rb - 1) // rb) < 8:
        half = rb // 2
        rb = max(_SUBLANES, half - half % _SUBLANES)
    return rb


def _forward_lane_dense(x, p_dec, n, chw):
    """Fast path: C*H*W divisible by 8*128 -> pure reshapes, no pad/slice."""
    rows = chw // _LANES
    xs = x.reshape(n, rows, _LANES)
    ps = p_dec.reshape(n * 2, rows, _LANES)   # row 2b = mean(b), 2b+1 = scale(b)

    rb = _choose_row_block(rows, n)
    grid = (n, (rows + rb - 1) // rb)

    blk = (1, rb, _LANES)
    x_spec = pl.BlockSpec(blk, lambda b, j: (b, j, 0))
    mean_spec = pl.BlockSpec(blk, lambda b, j: (2 * b, j, 0))
    scale_spec = pl.BlockSpec(blk, lambda b, j: (2 * b + 1, j, 0))

    total = n * chw
    out = pl.pallas_call(
        _entropy_kernel,
        out_shape=jax.ShapeDtypeStruct((n, rows, _LANES), jnp.float32),
        grid=grid,
        in_specs=[x_spec, mean_spec, scale_spec],
        out_specs=x_spec,
        compiler_params=pltpu.CompilerParams(
            dimension_semantics=("parallel", "parallel"),
        ),
        cost_estimate=pl.CostEstimate(
            flops=12 * total,
            transcendentals=2 * total,
            bytes_accessed=4 * total * 4,
        ),
    )(xs, ps, ps)   # p_dec passed twice: mean view and scale view
    return out.reshape(x.shape)


def _forward_padded(x, p_dec):
    """Remainder path for shapes whose per-image element count is not a
    multiple of 8*128: one extra pad/copy pass, same kernel."""
    xf = x.reshape(-1)
    mf = p_dec[:, 0].reshape(-1)
    sf = p_dec[:, 1].reshape(-1)
    num = xf.shape[0]
    tile = _SUBLANES * _LANES
    pad = (-num) % tile

    def slab(a, fill):
        return jnp.pad(a, (0, pad), constant_values=fill).reshape(-1, _LANES)

    xs, ms, ss = slab(xf, 0.0), slab(mf, 0.0), slab(sf, 1.0)
    rows = xs.shape[0]
    rb = _choose_row_block(rows, 1)
    grid = ((rows + rb - 1) // rb,)
    spec = pl.BlockSpec((rb, _LANES), lambda i: (i, 0))

    out = pl.pallas_call(
        _entropy_kernel,
        out_shape=jax.ShapeDtypeStruct((rows, _LANES), jnp.float32),
        grid=grid,
        in_specs=[spec, spec, spec],
        out_specs=spec,
        compiler_params=pltpu.CompilerParams(
            dimension_semantics=("parallel",),
        ),
    )(xs, ms, ss)
    return out.reshape(-1)[:num].reshape(x.shape)


@jax.jit
def distribution_for_entropy3(x, p_dec):
    """x: (N, C, H, W); p_dec: (N, 2, C, H, W) -> likelihood (N, C, H, W)."""
    x = x.astype(jnp.float32)
    p_dec = p_dec.astype(jnp.float32)
    n, c, h, w = x.shape
    chw = c * h * w
    if chw % (_SUBLANES * _LANES) == 0:
        return _forward_lane_dense(x, p_dec, n, chw)
    return _forward_padded(x, p_dec)


def _reference(x, p_dec):
    """Pure-JAX reference (matches the PyTorch forward)."""
    mean = p_dec[:, 0]
    scale = p_dec[:, 1]
    scale = jnp.where(scale == 0.0, 1e-9, scale)

    def cdf(v):
        return 0.5 * (1.0 + lax.erf((v - mean) / (scale * jnp.sqrt(2.0))))

    like = jnp.abs(cdf(x + 0.5) - cdf(x - 0.5))
    return jnp.maximum(like, 1e-6)


def _make_inputs(key, shape):
    n, c, h, w = shape
    k1, k2 = jax.random.split(key)
    x = jnp.round(jax.random.normal(k1, (n, c, h, w), dtype=jnp.float32) * 4.0)
    p_dec = jax.random.normal(k2, (n, 2, c, h, w), dtype=jnp.float32)
    scale_pos = jnp.abs(p_dec[:, 1]) + 0.1
    scale_pos = scale_pos.at[0, 0, 0, 0].set(0.0)   # exercise scale==0 branch
    p_dec = p_dec.at[:, 1].set(scale_pos)
    return x, p_dec


if __name__ == "__main__":
    key = jax.random.PRNGKey(0)
    k_a, k_b = jax.random.split(key)

    # Lane-dense fast path: C*H*W = 1024 is a multiple of 8*128.
    x, p_dec = _make_inputs(k_a, (2, 4, 16, 16))
    out = jax.block_until_ready(distribution_for_entropy3(x, p_dec))
    ref = _reference(x, p_dec)
    assert out.shape == x.shape
    assert jnp.allclose(out, ref, rtol=1e-5, atol=1e-6), "fast-path mismatch"

    # Padded remainder path: C*H*W = 105 is not a multiple of 8*128.
    x2, p_dec2 = _make_inputs(k_b, (1, 3, 5, 7))
    out2 = jax.block_until_ready(distribution_for_entropy3(x2, p_dec2))
    ref2 = _reference(x2, p_dec2)
    assert out2.shape == x2.shape
    assert jnp.allclose(out2, ref2, rtol=1e-5, atol=1e-6), "padded-path mismatch"

    print("KERNEL_OK")
</pallas_src>

<mosaic_0001>
module attributes {stable_mosaic.version = 11 : i64} {
  func.func @_entropy_kernel(%arg0: i32, %arg1: i32, %arg2: memref<1x8x128xf32, #tpu.memory_space<vmem>>, %arg3: memref<1x8x128xf32, #tpu.memory_space<vmem>>, %arg4: memref<1x8x128xf32, #tpu.memory_space<vmem>>, %arg5: memref<1x8x128xf32, #tpu.memory_space<vmem>>) attributes {dimension_semantics = [#tpu.dimension_semantics<parallel>, #tpu.dimension_semantics<parallel>], iteration_bounds = array<i64: 2, 1>, scalar_prefetch = 0 : i64, scratch_operands = 0 : i64, tpu.core_type = #tpu.core_type<tc>, window_params = [{transform_indices = @transform_0, window_bounds = array<i64: 1, 8, 128>}, {transform_indices = @transform_1, window_bounds = array<i64: 1, 8, 128>}, {transform_indices = @transform_2, window_bounds = array<i64: 1, 8, 128>}, {transform_indices = @transform_3, window_bounds = array<i64: 1, 8, 128>}]} {
    %c0 = arith.constant 0 : index
    %c0_0 = arith.constant 0 : index
    %c0_1 = arith.constant 0 : index
    %0 = vector.load %arg2[%c0, %c0_0, %c0_1] : memref<1x8x128xf32, #tpu.memory_space<vmem>>, vector<1x8x128xf32>
    %c0_2 = arith.constant 0 : index
    %c0_3 = arith.constant 0 : index
    %c0_4 = arith.constant 0 : index
    %1 = vector.load %arg3[%c0_2, %c0_3, %c0_4] : memref<1x8x128xf32, #tpu.memory_space<vmem>>, vector<1x8x128xf32>
    %c0_5 = arith.constant 0 : index
    %c0_6 = arith.constant 0 : index
    %c0_7 = arith.constant 0 : index
    %2 = vector.load %arg4[%c0_5, %c0_6, %c0_7] : memref<1x8x128xf32, #tpu.memory_space<vmem>>, vector<1x8x128xf32>
    %cst = arith.constant 0.000000e+00 : f32
    %3 = vector.broadcast %cst : f32 to vector<1x8x128xf32>
    %4 = arith.cmpf oeq, %2, %3 : vector<1x8x128xf32>
    %cst_8 = arith.constant 9.99999971E-10 : f32
    %5 = vector.broadcast %cst_8 : f32 to vector<1x8x128xf32>
    %6 = arith.select %4, %5, %2 : vector<1x8x128xi1>, vector<1x8x128xf32>
    %cst_9 = arith.constant 0.707106769 : f32
    %7 = vector.broadcast %cst_9 : f32 to vector<1x8x128xf32>
    %8 = arith.divf %7, %6 : vector<1x8x128xf32>
    %9 = arith.subf %0, %1 : vector<1x8x128xf32>
    %10 = arith.mulf %9, %8 : vector<1x8x128xf32>
    %cst_10 = arith.constant 5.000000e-01 : f32
    %11 = vector.broadcast %cst_10 : f32 to vector<1x8x128xf32>
    %12 = arith.mulf %11, %8 : vector<1x8x128xf32>
    %13 = arith.addf %10, %12 : vector<1x8x128xf32>
    %14 = math.erf %13 : vector<1x8x128xf32>
    %15 = arith.subf %10, %12 : vector<1x8x128xf32>
    %16 = math.erf %15 : vector<1x8x128xf32>
    %17 = arith.subf %14, %16 : vector<1x8x128xf32>
    %18 = math.absf %17 : vector<1x8x128xf32>
    %cst_11 = arith.constant 5.000000e-01 : f32
    %19 = vector.broadcast %cst_11 : f32 to vector<1x8x128xf32>
    %20 = arith.mulf %19, %18 : vector<1x8x128xf32>
    %cst_12 = arith.constant 9.99999997E-7 : f32
    %21 = vector.broadcast %cst_12 : f32 to vector<1x8x128xf32>
    %22 = arith.maximumf %20, %21 : vector<1x8x128xf32>
    %c0_13 = arith.constant 0 : index
    %c0_14 = arith.constant 0 : index
    %c0_15 = arith.constant 0 : index
    %23 = vector.load %arg5[%c0_13, %c0_14, %c0_15] : memref<1x8x128xf32, #tpu.memory_space<vmem>>, vector<1x8x128xf32>
    tpu.vector_store %arg5[%c0_13, %c0_14, %c0_15], %22 {strides = array<i32>} : memref<1x8x128xf32, #tpu.memory_space<vmem>>, vector<1x8x128xf32>,
    return
  }
  func.func @transform_0(%arg0: i32, %arg1: i32) -> (i32, i32, i32) {
    %c0_i32 = arith.constant 0 : i32
    %c0_i32_0 = arith.constant 0 : i32
    return %arg0, %arg1, %c0_i32 : i32, i32, i32
  }
  func.func @transform_1(%arg0: i32, %arg1: i32) -> (i32, i32, i32) {
    %c2_i32 = arith.constant 2 : i32
    %0 = arith.muli %c2_i32, %arg0 : i32
    %c0_i32 = arith.constant 0 : i32
    %c0_i32_0 = arith.constant 0 : i32
    return %0, %arg1, %c0_i32 : i32, i32, i32
  }
  func.func @transform_2(%arg0: i32, %arg1: i32) -> (i32, i32, i32) {
    %c2_i32 = arith.constant 2 : i32
    %0 = arith.muli %c2_i32, %arg0 : i32
    %c1_i32 = arith.constant 1 : i32
    %1 = arith.addi %0, %c1_i32 : i32
    %c0_i32 = arith.constant 0 : i32
    %c0_i32_0 = arith.constant 0 : i32
    return %1, %arg1, %c0_i32 : i32, i32, i32
  }
  func.func @transform_3(%arg0: i32, %arg1: i32) -> (i32, i32, i32) {
    %c0_i32 = arith.constant 0 : i32
    %c0_i32_0 = arith.constant 0 : i32
    return %arg0, %arg1, %c0_i32 : i32, i32, i32
  }
}

</mosaic_0001>

<bundles_post_ra>
// kernel: distribution_for_entropy3.1
= control target key start
LH: loop header
LB: loop body
LE: loop exit
PB: predicated region body
PF: predicated region fallthrough
CT: control target
= control target key end

     0   :  { %s581_s12 = smov 0   ;;  %s583_s13 = smov 0   ;;  %s637_s0 = inlined_call_operand.vmem [shape: f32[2,8,128], index: 0, kind: input, shape index: {}]   ;;  %s638_s1 = inlined_call_operand.vmem [shape: f32[4,8,128], index: 1, kind: input, shape index: {}, may-alias: {1,2}]   ;;  %s639_s2 = inlined_call_operand.vmem [shape: f32[4,8,128], index: 2, kind: input, shape index: {}, may-alias: {1,2}]   ;;  %s640_s3 = inlined_call_operand.vmem [shape: f32[2,8,128], index: 3, kind: output, shape index: {}]  }
   0x1   :  { %s585_s14 = smov 0  }
   0x2 LB: > { %s25_s15 = sadd.s32 1, %s555_s13  ;;  %p496_p0 = scmp.ge.s32.totalorder %s559_s14, 1  ;;  %s559_s14 = sphi %s585_s14, %s13_s14   ;;  %s555_s13 = sphi %s583_s13, %s642_s13   ;;  %s551_s12 = sphi %s581_s12, %s641_s12  }
   0x3   : > { %p27_p1 = scmp.ge.s32.totalorder %s25_s15, 2  ;;  %p195_p2 = scmp.lt.s32.totalorder %s559_s14, 3 }
   0x5   : > { %s644_s15 = smov (%p27_p1, %s25_s15), 0  ;;  %p196_p3 = pnand %p496_p0, %p195_p2 }
   0x6   : > { %s498_s16 = sshll.u32 (!%p196_p3), %s551_s12, 1  ;;  %p240_p5 = scmp.lt.s32.totalorder (!%p196_p3), %s551_s12, 1 }
   0x7   : > { %199 = sbr.rel (%p196_p3) target bundleno = 96 (0x60), region = 32  ;;  %s257_s17 = sadd.s32 (!%p196_p3), 1, %s498_s16 }
   0x8   : > { %p258_p4 = scmp.lt.s32.totalorder (!%p196_p3), %s257_s17, 3  ;;  %p248_p6 = scmp.lt.s32.totalorder (!%p196_p3), %s498_s16, 3 }
   0xc   : > { %s646_s17 = smov (!%p258_p4, %s257_s17), 3  ;;  %s648_s12 = smov (!%p240_p5, %s551_s12), 1 }
   0xd   : > { %s501_s18 = sshll.u32 %s646_s17, 3  ;;  %s650_s16 = smov (!%p248_p6, %s498_s16), 3 }
   0xe   : > { %s264_s21 = scalar_lea.vmem %s639_s2, %s501_s18  ;;  %s497_s22 = sshll.u32 %s648_s12, 3 }
   0xf   : > { %v276_v0 = vld [vmem:[%s264_s21] sm:$0xff]  ;;  %s499_s23 = sshll.u32 %s650_s16, 3  ;;  %s246_s26 = scalar_lea.vmem %s637_s0, %s497_s22 }
  0x10   : > { %vm277_vm0 = vcmp.eq.f32.partialorder %v276_v0, 0.0  ;;  %s254_s29 = scalar_lea.vmem %s638_s1, %s499_s23  ;;  %v274_v8 = vld [vmem:[%s246_s26] sm:$0xff]  ;;  %s273_s5 = scalar_lea.vmem %s640_s3, %s497_s22 }
  0x11   : > { %v278_v1 = vsel %vm277_vm0, 1e-09, %v276_v0  ;;  %v275_v9 = vld [vmem:[%s254_s29] sm:$0xff] }
  0x12   : > { %531 = vrcp.f32 %v278_v1  ;;  %v290_v4 = vand.u32 2147483648, %v278_v1  ;;  %vm284_vm1 = vweird.f32 %v278_v1  ;;  %v288_v6 = vand.u32 2147483647, %v278_v1 }
  0x13   : > { %v294_v13 = vsub.f32 %v274_v8, %v275_v9 }
  0x14   : > { %v291_v10 = vor.u32 1.1754944e-38, %v290_v4  ;;  %vm289_vm4 = vcmp.eq.f32.partialorder %v288_v6, 8.507059e+37 }
  0x18   : > { %v532_v2 = vpop.eup %531 }
  0x19   : > { %v280_v3 = vmul.f32 %v532_v2, %v278_v1  ;;  %vm285_vm2 = vweird.f32 %v532_v2 }
  0x1a   : > { %vm286_vm3 = vmor %vm284_vm1, %vm285_vm2 }
  0x1b   : > { %v281_v5 = vsub.f32 1.0, %v280_v3 }
  0x1d   : > { %v282_v7 = vmul.f32 %v532_v2, %v281_v5 }
  0x1f   : > { %v283_v11 = vadd.f32 %v532_v2, %v282_v7 }
  0x21   : > { %v287_v12 = vsel %vm286_vm3, %v532_v2, %v283_v11 }
  0x22   : > { %v292_v14 = vsel %vm289_vm4, %v291_v10, %v287_v12 }
  0x23   : > { %v293_v15 = vmul.f32 0.70710677, %v292_v14 }
  0x25   : > { %v295_v16 = vmul.f32 %v294_v13, %v293_v15  ;;  %v296_v17 = vmul.f32 0.5, %v293_v15 }
  0x27   : > { %v613_v18 = vadd.f32 %v296_v17, %v295_v16  ;;  %v615_v19 = vsub.f32 %v295_v16, %v296_v17 }
  0x29   : > { %v298_v20 = vmul.f32 %v613_v18, %v613_v18  ;;  %v339_v21 = vmul.f32 %v615_v19, %v615_v19 }
  0x2b   : > { %v299_v22 = vmin.f32 %v298_v20, 16.0  ;;  %v340_v23 = vmin.f32 %v339_v21, 16.0 }
  0x2d   : > { %v300_v24 = vmul.f32 2.1237322e-06, %v299_v22  ;;  %v311_v25 = vmul.f32 3.8918573e-05, %v299_v22  ;;  %v341_v26 = vmul.f32 2.1237322e-06, %v340_v23 }
  0x2e   : > { %v352_v27 = vmul.f32 3.8918573e-05, %v340_v23 }
  0x2f   : > { %v301_v28 = vadd.f32 0.00028619796, %v300_v24  ;;  %v312_v29 = vadd.f32 0.001143296, %v311_v25  ;;  %v342_v30 = vadd.f32 0.00028619796, %v341_v26 }
  0x30   : > { %v353_v31 = vadd.f32 0.001143296, %v352_v27 }
  0x31   : > { %v302_v32 = vmul.f32 %v301_v28, %v299_v22  ;;  %v313_v33 = vmul.f32 %v312_v29, %v299_v22  ;;  %v343_v34 = vmul.f32 %v342_v30, %v340_v23 }
  0x32   : > { %v354_v35 = vmul.f32 %v353_v31, %v340_v23 }
  0x33   : > { %v303_v36 = vadd.f32 0.0036580483, %v302_v32  ;;  %v314_v37 = vadd.f32 0.014752088, %v313_v33  ;;  %v344_v38 = vadd.f32 0.0036580483, %v343_v34 }
  0x34   : > { %v355_v39 = vadd.f32 0.014752088, %v354_v35 }
  0x35   : > { %v304_v40 = vmul.f32 %v303_v36, %v299_v22  ;;  %v315_v41 = vmul.f32 %v314_v37, %v299_v22  ;;  %v345_v42 = vmul.f32 %v344_v38, %v340_v23 }
  0x36   : > { %v356_v43 = vmul.f32 %v355_v39, %v340_v23 }
  0x37   : > { %v316_v44 = vadd.f32 0.112945676, %v315_v41  ;;  %v305_v45 = vadd.f32 0.05243302, %v304_v40  ;;  %v346_v48 = vadd.f32 0.05243302, %v345_v42 }
  0x38   : > { %v357_v46 = vadd.f32 0.112945676, %v356_v43 }
  0x39   : > { %v317_v47 = vmul.f32 %v316_v44, %v299_v22  ;;  %v306_v51 = vmul.f32 %v305_v45, %v299_v22  ;;  %v347_v54 = vmul.f32 %v346_v48, %v340_v23 }
  0x3a   : > { %v358_v49 = vmul.f32 %v357_v46, %v340_v23 }
  0x3b   : > { %v318_v50 = vadd.f32 0.4994258, %v317_v47  ;;  %v307_v57 = vadd.f32 0.18741608, %v306_v51  ;;  %v348_v59 = vadd.f32 0.18741608, %v347_v54 }
  0x3c   : > { %v359_v52 = vadd.f32 0.4994258, %v358_v49 }
  0x3d   : > { %v319_v53 = vmul.f32 %v318_v50, %v299_v22  ;;  %v308_v60 = vmul.f32 %v307_v57, %v299_v22  ;;  %v349_v61 = vmul.f32 %v348_v59, %v340_v23 }
  0x3e   : > { %v360_v55 = vmul.f32 %v359_v52, %v340_v23 }
  0x3f   : > { %v320_v56 = vadd.f32 1.0, %v319_v53  ;;  %v309_v0 = vadd.f32 1.1283791, %v308_v60  ;;  %v350_v3 = vadd.f32 1.1283791, %v349_v61 }
  0x40   : > { %v361_v58 = vadd.f32 1.0, %v360_v55 }
  0x41   : > { %533 = vrcp.f32 %v320_v56  ;;  %vm326_vm5 = vweird.f32 %v320_v56  ;;  %v332_v2 = vand.u32 2147483648, %v320_v56  ;;  %v330_v6 = vand.u32 2147483647, %v320_v56 }
  0x42   : > { %535 = vrcp.f32 %v361_v58  ;;  %v373_v7 = vand.u32 2147483648, %v361_v58  ;;  %vm367_vm7 = vweird.f32 %v361_v58  ;;  %v371_v9 = vand.u32 2147483647, %v361_v58 }
  0x43   : > { %v333_v11 = vor.u32 1.1754944e-38, %v332_v2  ;;  %v310_v13 = vmul.f32 %v309_v0, %v613_v18  ;;  %vm331_vm10 = vcmp.eq.f32.partialorder %v330_v6, 8.507059e+37  ;;  %v351_v16 = vmul.f32 %v350_v3, %v615_v19 }
  0x44   : > { %v374_v15 = vor.u32 1.1754944e-38, %v373_v7  ;;  %vm372_vm12 = vcmp.eq.f32.partialorder %v371_v9, 8.507059e+37 }
  0x47   : > { %v534_v62 = vpop.eup %533 }
  0x48   : > { %v536_v63 = vpop.eup %535  ;;  %v322_v1 = vmul.f32 %v534_v62, %v320_v56  ;;  %vm327_vm6 = vweird.f32 %v534_v62 }
  0x49   : > { %v363_v4 = vmul.f32 %v536_v63, %v361_v58  ;;  %vm368_vm8 = vweird.f32 %v536_v63  ;;  %vm328_vm9 = vmor %vm326_vm5, %vm327_vm6 }
  0x4a   : > { %v323_v5 = vsub.f32 1.0, %v322_v1  ;;  %vm369_vm11 = vmor %vm367_vm7, %vm368_vm8 }
  0x4b   : > { %v364_v8 = vsub.f32 1.0, %v363_v4 }
  0x4c   : > { %v324_v10 = vmul.f32 %v534_v62, %v323_v5 }
  0x4d   : > { %v365_v12 = vmul.f32 %v536_v63, %v364_v8 }
  0x4e   : > { %v325_v14 = vadd.f32 %v534_v62, %v324_v10 }
  0x4f   : > { %v366_v17 = vadd.f32 %v536_v63, %v365_v12 }
  0x50   : > { %v329_v20 = vsel %vm328_vm9, %v534_v62, %v325_v14 }
  0x51   : > { %v334_v21 = vsel %vm331_vm10, %v333_v11, %v329_v20  ;;  %v370_v22 = vsel %vm369_vm11, %v536_v63, %v366_v17 }
  0x52   : > { %v335_v23 = vmul.f32 %v334_v21, %v310_v13  ;;  %v375_v24 = vsel %vm372_vm12, %v374_v15, %v370_v22 }
  0x53   : > { %v376_v25 = vmul.f32 %v375_v24, %v351_v16 }
  0x54   : > { %v503_v26 = vclamps-f32 %v335_v23, 1.0 }
  0x55   : > { %v504_v27 = vclamps-f32 %v376_v25, 1.0 }
  0x57   : > { %v379_v28 = vsub.f32 %v503_v26, %v504_v27 }
  0x59   : > { %v380_v29 = vand.u32 2147483647, %v379_v28 }
  0x5b   : > { %v381_v18 = vmul.f32 0.5, %v380_v29 }
  0x5d   : > { %v382_v30 = vmax.f32 %v381_v18, 1e-06 }
  0x5f   : > { %383 = vst [vmem:[%s273_s5] sm:$0xff] %v382_v30 }
  0x60 PF: > { %s13_s14 = sadd.s32 1, %s559_s14   ;;  %s641_s12 = smov %s555_s13 }
  0x61   : > { %p10_p7 = scmp.ge.s32.totalorder %s13_s14, 4   ;;  %s642_s13 = smov %s644_s15 }
  0x63   :  { %12 = sbr.rel (!%p10_p7) target bundleno = 2 (0x2), region = 68 }

</bundles_post_ra>
